<compile_context>
chip_gen: v6e
topology: v6e:2x2x1
jax: 0.10.0
libtpu: 0.0.40
codegen_flags: <defaults>
</compile_context>

<pallas_src>
import functools

import jax
import jax.numpy as jnp
from jax.experimental import pallas as pl
from jax.experimental.pallas import tpu as pltpu


# ----------------------------- Pallas kernel -------------------------------- #
def rgcn_fused_kernel(x_ref, mask_ref, w1_ref, b1_ref, w2_ref, b2_ref, o_ref,
                      slab_ref, *, shifts, cin, cout, stride):
    """Fused 2-layer RGCN for one lane chunk (batch folded into lanes).

    x_ref   : (cin, BN)            node features, node index on the lane axis
    mask_ref: (4, BN)              per-relation boundary masks (0/1 float)
    w1_ref  : (hid, 5*stride)      [root | W_0..W_3]^T, columns zero-padded to
                                   sublane-aligned slab offsets (layer 1)
    b1_ref  : (hid, 1)             layer-1 bias (broadcast over lanes)
    w2_ref  : (5*cout, hid)        [root | W_0..W_3]^T stacked along rows (layer 2)
    b2_ref  : (cout, 1)            layer-2 bias
    o_ref   : (cout, BN)           sigmoid output
    slab_ref: (5*stride, BN)       VMEM scratch: zero-padded gather slab
    """
    # Hoisted per-relation mask rows (lane-dense (1, BN) views), reused by both
    # layers instead of re-slicing (4, BN) per relation per layer.
    m = [mask_ref[r:r + 1, :] for r in range(4)]

    x = x_ref[...]                                            # (cin, BN)

    # ---- Layer 1: gather-then-matmul via sublane-aligned slab ---------------
    # Zero every step so the padding rows stay zero regardless of how the grid
    # is split across cores; data rows are fully overwritten below.
    slab_ref[...] = jnp.zeros_like(slab_ref)
    slab_ref[0:cin, :] = x                                    # self features
    for r, s in enumerate(shifts):
        # Relation-r gather = lane roll by the relation shift (XLU), zeroed at
        # the grid boundary (the mask also kills batch-boundary / array wrap).
        rolled = pltpu.roll(x, shift=s, axis=1)
        base = (r + 1) * stride                               # 8-aligned offset
        slab_ref[base:base + cin, :] = rolled * m[r]

    h = jnp.dot(w1_ref[...], slab_ref[...],
                preferred_element_type=jnp.float32) + b1_ref[...]
    h = jnp.maximum(h, 0.0)                                   # ReLU
    # TODO(synk): train-mode dropout (stochastic masking) not implemented;
    #             F.dropout is identity in eval mode.

    # ---- Layer 2: matmul-then-gather (roll only (cout, BN) rows) ------------
    z = jnp.dot(w2_ref[...], h, preferred_element_type=jnp.float32)  # (5*cout, BN)
    out = z[0:cout, :]                                        # root contribution
    for r, s in enumerate(shifts):
        zr = z[(r + 1) * cout:(r + 2) * cout, :]
        out = out + pltpu.roll(zr, shift=s, axis=1) * m[r]
    out = out + b2_ref[...]
    o_ref[...] = jax.nn.sigmoid(out).astype(o_ref.dtype)


# ------------------------------- glue (JAX) --------------------------------- #
def build_boundary_masks(H, W):
    """(4, N) float masks: 1 where the relation-r source neighbor exists.

    Relation/source convention (matches _get_grid_edges_with_relations with
    PyG source->target flow):
      rel 0: target (h, w) <- source (h+1, w)   -> valid iff h < H-1
      rel 1: target (h, w) <- source (h-1, w)   -> valid iff h > 0
      rel 2: target (h, w) <- source (h, w+1)   -> valid iff w < W-1
      rel 3: target (h, w) <- source (h, w-1)   -> valid iff w > 0
    """
    n = jnp.arange(H * W)
    h = n // W
    w = n % W
    return jnp.stack([h < H - 1, h > 0, w < W - 1, w > 0]).astype(jnp.float32)


def stack_layer1_weights(wrel, root, bias, stride):
    """-> (Cout, 5*stride) with each piece's Cin columns at 8-aligned offsets."""
    cin, cout = root.shape
    w = jnp.zeros((cout, 5 * stride), jnp.float32)
    w = w.at[:, 0:cin].set(root.T)
    for r in range(wrel.shape[0]):
        col = (r + 1) * stride
        w = w.at[:, col:col + cin].set(wrel[r].T)
    return w, bias.reshape(cout, 1)


def stack_layer2_weights(wrel, root, bias):
    """-> (5*Cout, Cin) rows stacked as [root^T, W_0^T, ..., W_3^T]."""
    cin, cout = root.shape
    w = jnp.concatenate([root.T] + [wrel[r].T for r in range(wrel.shape[0])],
                        axis=0)
    return w, bias.reshape(cout, 1)


def init_params(key, in_channels, hidden_channels, out_channels, num_relations):
    """Deterministic synthetic init: weights ~ N(0, 0.02), biases = 0."""
    dims = [(in_channels, hidden_channels), (hidden_channels, out_channels)]
    params = []
    for cin, cout in dims:
        key, k1, k2 = jax.random.split(key, 3)
        wrel = 0.02 * jax.random.normal(k1, (num_relations, cin, cout), jnp.float32)
        root = 0.02 * jax.random.normal(k2, (cin, cout), jnp.float32)
        bias = jnp.zeros((cout,), jnp.float32)
        params.append((wrel, root, bias))
    return params


def rgcn_congestion_forward(x_nchw, params, *, num_lane_chunks=1):
    """x_nchw: (B, C, H, W) float32 -> (B, out_channels, H, W), eval mode.

    num_lane_chunks: number of parallel grid steps (each takes B/num_lane_chunks
    whole batches worth of lanes).  Use 1 on v5e/v6e (single TensorCore); 2 on
    v7x so both TensorCores get a chunk.
    """
    assert len(params) == 2, "fused kernel implements the default num_layers=2"
    B, C, H, W = x_nchw.shape
    assert C <= 8, "layer-1 slab assumes in_channels <= 8 (module default is 3)"
    assert B % num_lane_chunks == 0
    N = H * W
    BN = B * N
    bg = B // num_lane_chunks            # batches per grid step
    bn_chunk = bg * N                    # lanes per grid step

    stride = 8 * ((C + 7) // 8)          # sublane-aligned piece stride (=8 here)
    (w1rel, root1, bias1), (w2rel, root2, bias2) = params
    hid = root1.shape[1]
    cout = root2.shape[1]

    w1, b1 = stack_layer1_weights(w1rel, root1, bias1, stride)  # (hid, 5*stride)
    w2, b2 = stack_layer2_weights(w2rel, root2, bias2)          # (5*cout, hid)

    # Fold batch into the lane axis: lane index = b*N + h*W + w.
    x = jnp.transpose(x_nchw.reshape(B, C, N), (1, 0, 2)).reshape(C, BN)
    # Per-chunk masks (identical for every chunk since chunks are whole batches).
    masks = jnp.tile(build_boundary_masks(H, W), (1, bg))       # (4, bn_chunk)

    # pltpu.roll: out[:, j] = in[:, (j - shift) % L]; gather from n+W/n-W/n+1/n-1.
    shifts = tuple(int(s) % bn_chunk for s in (bn_chunk - W, W, bn_chunk - 1, 1))

    # Explicit VMEM budget: per-lane bytes of the chunk working set (inputs
    # double-buffered, slab scratch, hidden activation, layer-2 rows, output),
    # with 2x headroom; kept under v7x's 64 MiB physical VMEM.
    lane_bytes = 4 * (2 * C + 4 + 5 * stride + hid + 2 * 5 * cout + 4 * cout)
    vmem_limit = int(min(max(2 * lane_bytes * bn_chunk + (1 << 20), 16 << 20),
                         60 << 20))

    kernel = functools.partial(rgcn_fused_kernel, shifts=shifts,
                               cin=C, cout=cout, stride=stride)
    out = pl.pallas_call(
        kernel,
        out_shape=jax.ShapeDtypeStruct((cout, BN), jnp.float32),
        grid=(num_lane_chunks,),
        in_specs=[
            pl.BlockSpec((C, bn_chunk), lambda g: (0, g)),       # feature chunk
            # Grid-invariant operands (constant index maps -> fetched once):
            pl.BlockSpec((4, bn_chunk), lambda g: (0, 0)),
            pl.BlockSpec((hid, 5 * stride), lambda g: (0, 0)),
            pl.BlockSpec((hid, 1), lambda g: (0, 0)),
            pl.BlockSpec((5 * cout, hid), lambda g: (0, 0)),
            pl.BlockSpec((cout, 1), lambda g: (0, 0)),
        ],
        out_specs=pl.BlockSpec((cout, bn_chunk), lambda g: (0, g)),
        scratch_shapes=[pltpu.VMEM((5 * stride, bn_chunk), jnp.float32)],
        compiler_params=pltpu.CompilerParams(
            dimension_semantics=("parallel",),
            vmem_limit_bytes=vmem_limit),
    )(x, masks, w1, b1, w2, b2)

    return jnp.transpose(out.reshape(cout, B, N), (1, 0, 2)).reshape(B, cout, H, W)


# ---------------------------- pure-JAX reference ----------------------------- #
def rgcn_congestion_reference(x_nchw, params):
    """Independent spatial-domain formulation (shift via pad/concat in H/W)."""
    B, C, H, W = x_nchw.shape
    x = jnp.transpose(x_nchw, (0, 2, 3, 1))      # (B, H, W, C)
    n_layers = len(params)
    for i, (wrel, root, bias) in enumerate(params):
        cin = x.shape[-1]
        zeros_h = jnp.zeros((B, 1, W, cin), x.dtype)
        zeros_w = jnp.zeros((B, H, 1, cin), x.dtype)
        up    = jnp.concatenate([x[:, 1:], zeros_h], axis=1)      # rel 0: (h+1, w)
        down  = jnp.concatenate([zeros_h, x[:, :-1]], axis=1)     # rel 1: (h-1, w)
        left  = jnp.concatenate([x[:, :, 1:], zeros_w], axis=2)   # rel 2: (h, w+1)
        right = jnp.concatenate([zeros_w, x[:, :, :-1]], axis=2)  # rel 3: (h, w-1)
        out = jnp.einsum("bhwc,cd->bhwd", x, root)
        for r, nb in enumerate([up, down, left, right]):
            out = out + jnp.einsum("bhwc,cd->bhwd", nb, wrel[r])
        out = out + bias
        x = jax.nn.sigmoid(out) if i == n_layers - 1 else jnp.maximum(out, 0.0)
    return jnp.transpose(x, (0, 3, 1, 2))


# ----------------------------------- main ------------------------------------ #
if __name__ == "__main__":
    B, C, H, W = 2, 3, 16, 16            # in_channels=3 (module default)
    hidden_channels = 32                 # module default is 64; small for the demo
    out_channels = 1
    num_relations = 4

    key = jax.random.PRNGKey(0)
    kx, kp = jax.random.split(key)
    x = jax.random.normal(kx, (B, C, H, W), jnp.float32)

    params = init_params(kp, C, hidden_channels, out_channels, num_relations)

    ref = jax.block_until_ready(rgcn_congestion_reference(x, params))

    # Single fat grid step (batch folded into lanes): best on v5e/v6e (1 TC).
    out1 = jax.block_until_ready(rgcn_congestion_forward(x, params, num_lane_chunks=1))
    # Two parallel lane chunks (one batch group each): feeds both v7x TCs.
    out2 = jax.block_until_ready(rgcn_congestion_forward(x, params, num_lane_chunks=2))

    assert out1.shape == (B, out_channels, H, W), out1.shape
    assert jnp.allclose(out1, ref, atol=1e-5, rtol=1e-5), float(jnp.max(jnp.abs(out1 - ref)))
    assert jnp.allclose(out2, ref, atol=1e-5, rtol=1e-5), float(jnp.max(jnp.abs(out2 - ref)))
    print("KERNEL_OK")
</pallas_src>

<mosaic_0001>
module attributes {stable_mosaic.version = 11 : i64} {
  func.func @rgcn_fused_kernel(%arg0: i32, %arg1: memref<3x512xf32, #tpu.memory_space<vmem>>, %arg2: memref<4x512xf32, #tpu.memory_space<vmem>>, %arg3: memref<32x40xf32, #tpu.memory_space<vmem>>, %arg4: memref<32x1xf32, #tpu.memory_space<vmem>>, %arg5: memref<5x32xf32, #tpu.memory_space<vmem>>, %arg6: memref<1x1xf32, #tpu.memory_space<vmem>>, %arg7: memref<1x512xf32, #tpu.memory_space<vmem>>, %arg8: memref<40x512xf32, #tpu.memory_space<vmem>>) attributes {dimension_semantics = [#tpu.dimension_semantics<parallel>], iteration_bounds = array<i64: 1>, scalar_prefetch = 0 : i64, scratch_operands = 1 : i64, tpu.core_type = #tpu.core_type<tc>, window_params = [{transform_indices = @transform_0, window_bounds = array<i64: 3, 512>}, {pipeline_mode = #tpu.pipeline_mode<synchronous>, transform_indices = @transform_1, window_bounds = array<i64: 4, 512>}, {pipeline_mode = #tpu.pipeline_mode<synchronous>, transform_indices = @transform_2, window_bounds = array<i64: 32, 40>}, {pipeline_mode = #tpu.pipeline_mode<synchronous>, transform_indices = @transform_3, window_bounds = array<i64: 32, 1>}, {pipeline_mode = #tpu.pipeline_mode<synchronous>, transform_indices = @transform_4, window_bounds = array<i64: 5, 32>}, {pipeline_mode = #tpu.pipeline_mode<synchronous>, transform_indices = @transform_5, window_bounds = array<i64: 1, 1>}, {transform_indices = @transform_6, window_bounds = array<i64: 1, 512>}]} {
    %c0 = arith.constant 0 : index
    %c0_0 = arith.constant 0 : index
    %0 = vector.load %arg2[%c0, %c0_0] : memref<4x512xf32, #tpu.memory_space<vmem>>, vector<1x512xf32>
    %c1 = arith.constant 1 : index
    %c0_1 = arith.constant 0 : index
    %1 = vector.load %arg2[%c1, %c0_1] : memref<4x512xf32, #tpu.memory_space<vmem>>, vector<1x512xf32>
    %c2 = arith.constant 2 : index
    %c0_2 = arith.constant 0 : index
    %2 = vector.load %arg2[%c2, %c0_2] : memref<4x512xf32, #tpu.memory_space<vmem>>, vector<1x512xf32>
    %c3 = arith.constant 3 : index
    %c0_3 = arith.constant 0 : index
    %3 = vector.load %arg2[%c3, %c0_3] : memref<4x512xf32, #tpu.memory_space<vmem>>, vector<1x512xf32>
    %c0_4 = arith.constant 0 : index
    %c0_5 = arith.constant 0 : index
    %4 = vector.load %arg1[%c0_4, %c0_5] : memref<3x512xf32, #tpu.memory_space<vmem>>, vector<3x512xf32>
    %cst = arith.constant 0.000000e+00 : f32
    %5 = vector.broadcast %cst : f32 to vector<40x512xf32>
    %c0_6 = arith.constant 0 : index
    %c0_7 = arith.constant 0 : index
    %6 = vector.load %arg8[%c0_6, %c0_7] : memref<40x512xf32, #tpu.memory_space<vmem>>, vector<40x512xf32>
    tpu.vector_store %arg8[%c0_6, %c0_7], %5 {strides = array<i32>} : memref<40x512xf32, #tpu.memory_space<vmem>>, vector<40x512xf32>,
    %c0_8 = arith.constant 0 : index
    %c0_9 = arith.constant 0 : index
    %7 = vector.load %arg8[%c0_8, %c0_9] : memref<40x512xf32, #tpu.memory_space<vmem>>, vector<3x512xf32>
    tpu.vector_store %arg8[%c0_8, %c0_9], %4 {strides = array<i32>} : memref<40x512xf32, #tpu.memory_space<vmem>>, vector<3x512xf32>,
    %c496_i32 = arith.constant 496 : i32
    %8 = tpu.dynamic_rotate %4 by %c496_i32 dim 1 : vector<3x512xf32>, i32 -> vector<3x512xf32>
    %9 = vector.broadcast %0 : vector<1x512xf32> to vector<3x512xf32>
    %10 = arith.mulf %8, %9 : vector<3x512xf32>
    %c8 = arith.constant 8 : index
    %c0_10 = arith.constant 0 : index
    %11 = vector.load %arg8[%c8, %c0_10] : memref<40x512xf32, #tpu.memory_space<vmem>>, vector<3x512xf32>
    tpu.vector_store %arg8[%c8, %c0_10], %10 {strides = array<i32>} : memref<40x512xf32, #tpu.memory_space<vmem>>, vector<3x512xf32>,
    %c16_i32 = arith.constant 16 : i32
    %12 = tpu.dynamic_rotate %4 by %c16_i32 dim 1 : vector<3x512xf32>, i32 -> vector<3x512xf32>
    %13 = vector.broadcast %1 : vector<1x512xf32> to vector<3x512xf32>
    %14 = arith.mulf %12, %13 : vector<3x512xf32>
    %c16 = arith.constant 16 : index
    %c0_11 = arith.constant 0 : index
    %15 = vector.load %arg8[%c16, %c0_11] : memref<40x512xf32, #tpu.memory_space<vmem>>, vector<3x512xf32>
    tpu.vector_store %arg8[%c16, %c0_11], %14 {strides = array<i32>} : memref<40x512xf32, #tpu.memory_space<vmem>>, vector<3x512xf32>,
    %c511_i32 = arith.constant 511 : i32
    %16 = tpu.dynamic_rotate %4 by %c511_i32 dim 1 : vector<3x512xf32>, i32 -> vector<3x512xf32>
    %17 = vector.broadcast %2 : vector<1x512xf32> to vector<3x512xf32>
    %18 = arith.mulf %16, %17 : vector<3x512xf32>
    %c24 = arith.constant 24 : index
    %c0_12 = arith.constant 0 : index
    %19 = vector.load %arg8[%c24, %c0_12] : memref<40x512xf32, #tpu.memory_space<vmem>>, vector<3x512xf32>
    tpu.vector_store %arg8[%c24, %c0_12], %18 {strides = array<i32>} : memref<40x512xf32, #tpu.memory_space<vmem>>, vector<3x512xf32>,
    %c1_i32 = arith.constant 1 : i32
    %20 = tpu.dynamic_rotate %4 by %c1_i32 dim 1 : vector<3x512xf32>, i32 -> vector<3x512xf32>
    %21 = vector.broadcast %3 : vector<1x512xf32> to vector<3x512xf32>
    %22 = arith.mulf %20, %21 : vector<3x512xf32>
    %c32 = arith.constant 32 : index
    %c0_13 = arith.constant 0 : index
    %23 = vector.load %arg8[%c32, %c0_13] : memref<40x512xf32, #tpu.memory_space<vmem>>, vector<3x512xf32>
    tpu.vector_store %arg8[%c32, %c0_13], %22 {strides = array<i32>} : memref<40x512xf32, #tpu.memory_space<vmem>>, vector<3x512xf32>,
    %c0_14 = arith.constant 0 : index
    %c0_15 = arith.constant 0 : index
    %24 = vector.load %arg3[%c0_14, %c0_15] : memref<32x40xf32, #tpu.memory_space<vmem>>, vector<32x40xf32>
    %c0_16 = arith.constant 0 : index
    %c0_17 = arith.constant 0 : index
    %25 = vector.load %arg8[%c0_16, %c0_17] : memref<40x512xf32, #tpu.memory_space<vmem>>, vector<40x512xf32>
    %cst_18 = arith.constant dense<0.000000e+00> : vector<32x512xf32>
    %26 = tpu.matmul %24, %25, %cst_18 {dimension_numbers = #tpu.dot_dimension_numbers<[1], [0], [0], [1], [0, 0, 1, 1], [], []>} : vector<32x40xf32>, vector<40x512xf32>, vector<32x512xf32> -> vector<32x512xf32>
    %c0_19 = arith.constant 0 : index
    %c0_20 = arith.constant 0 : index
    %27 = vector.load %arg4[%c0_19, %c0_20] : memref<32x1xf32, #tpu.memory_space<vmem>>, vector<32x1xf32>
    %28 = vector.broadcast %27 : vector<32x1xf32> to vector<32x512xf32>
    %29 = arith.addf %26, %28 : vector<32x512xf32>
    %cst_21 = arith.constant 0.000000e+00 : f32
    %30 = vector.broadcast %cst_21 : f32 to vector<32x512xf32>
    %31 = arith.maximumf %29, %30 : vector<32x512xf32>
    %c0_22 = arith.constant 0 : index
    %c0_23 = arith.constant 0 : index
    %32 = vector.load %arg5[%c0_22, %c0_23] : memref<5x32xf32, #tpu.memory_space<vmem>>, vector<5x32xf32>
    %cst_24 = arith.constant dense<0.000000e+00> : vector<5x512xf32>
    %33 = tpu.matmul %32, %31, %cst_24 {dimension_numbers = #tpu.dot_dimension_numbers<[1], [0], [0], [1], [0, 0, 1, 1], [], []>} : vector<5x32xf32>, vector<32x512xf32>, vector<5x512xf32> -> vector<5x512xf32>
    %34 = vector.extract_strided_slice %33 {offsets = [0, 0], sizes = [1, 512], strides = [1, 1]} : vector<5x512xf32> to vector<1x512xf32>
    %35 = vector.extract_strided_slice %33 {offsets = [1, 0], sizes = [1, 512], strides = [1, 1]} : vector<5x512xf32> to vector<1x512xf32>
    %c496_i32_25 = arith.constant 496 : i32
    %36 = tpu.dynamic_rotate %35 by %c496_i32_25 dim 1 : vector<1x512xf32>, i32 -> vector<1x512xf32>
    %37 = arith.mulf %36, %0 : vector<1x512xf32>
    %38 = arith.addf %34, %37 : vector<1x512xf32>
    %39 = vector.extract_strided_slice %33 {offsets = [2, 0], sizes = [1, 512], strides = [1, 1]} : vector<5x512xf32> to vector<1x512xf32>
    %c16_i32_26 = arith.constant 16 : i32
    %40 = tpu.dynamic_rotate %39 by %c16_i32_26 dim 1 : vector<1x512xf32>, i32 -> vector<1x512xf32>
    %41 = arith.mulf %40, %1 : vector<1x512xf32>
    %42 = arith.addf %38, %41 : vector<1x512xf32>
    %43 = vector.extract_strided_slice %33 {offsets = [3, 0], sizes = [1, 512], strides = [1, 1]} : vector<5x512xf32> to vector<1x512xf32>
    %c511_i32_27 = arith.constant 511 : i32
    %44 = tpu.dynamic_rotate %43 by %c511_i32_27 dim 1 : vector<1x512xf32>, i32 -> vector<1x512xf32>
    %45 = arith.mulf %44, %2 : vector<1x512xf32>
    %46 = arith.addf %42, %45 : vector<1x512xf32>
    %47 = vector.extract_strided_slice %33 {offsets = [4, 0], sizes = [1, 512], strides = [1, 1]} : vector<5x512xf32> to vector<1x512xf32>
    %c1_i32_28 = arith.constant 1 : i32
    %48 = tpu.dynamic_rotate %47 by %c1_i32_28 dim 1 : vector<1x512xf32>, i32 -> vector<1x512xf32>
    %49 = arith.mulf %48, %3 : vector<1x512xf32>
    %50 = arith.addf %46, %49 : vector<1x512xf32>
    %c0_29 = arith.constant 0 : index
    %c0_30 = arith.constant 0 : index
    %51 = vector.load %arg6[%c0_29, %c0_30] : memref<1x1xf32, #tpu.memory_space<vmem>>, vector<1x1xf32>
    %52 = vector.broadcast %51 : vector<1x1xf32> to vector<1x512xf32>
    %53 = arith.addf %50, %52 : vector<1x512xf32>
    %54 = arith.negf %53 : vector<1x512xf32>
    %55 = math.exp %54 : vector<1x512xf32>
    %cst_31 = arith.constant 1.000000e+00 : f32
    %56 = vector.broadcast %cst_31 : f32 to vector<1x512xf32>
    %57 = arith.addf %56, %55 : vector<1x512xf32>
    %58 = arith.divf %56, %57 : vector<1x512xf32>
    %c0_32 = arith.constant 0 : index
    %c0_33 = arith.constant 0 : index
    %59 = vector.load %arg7[%c0_32, %c0_33] : memref<1x512xf32, #tpu.memory_space<vmem>>, vector<1x512xf32>
    tpu.vector_store %arg7[%c0_32, %c0_33], %58 {strides = array<i32>} : memref<1x512xf32, #tpu.memory_space<vmem>>, vector<1x512xf32>,
    return
  }
  func.func @transform_0(%arg0: i32) -> (i32, i32) {
    %c0_i32 = arith.constant 0 : i32
    %c0_i32_0 = arith.constant 0 : i32
    return %c0_i32, %arg0 : i32, i32
  }
  func.func @transform_1(%arg0: i32) -> (i32, i32) {
    %c0_i32 = arith.constant 0 : i32
    %c0_i32_0 = arith.constant 0 : i32
    %c0_i32_1 = arith.constant 0 : i32
    return %c0_i32, %c0_i32_0 : i32, i32
  }
  func.func @transform_2(%arg0: i32) -> (i32, i32) {
    %c0_i32 = arith.constant 0 : i32
    %c0_i32_0 = arith.constant 0 : i32
    %c0_i32_1 = arith.constant 0 : i32
    return %c0_i32, %c0_i32_0 : i32, i32
  }
  func.func @transform_3(%arg0: i32) -> (i32, i32) {
    %c0_i32 = arith.constant 0 : i32
    %c0_i32_0 = arith.constant 0 : i32
    %c0_i32_1 = arith.constant 0 : i32
    return %c0_i32, %c0_i32_0 : i32, i32
  }
  func.func @transform_4(%arg0: i32) -> (i32, i32) {
    %c0_i32 = arith.constant 0 : i32
    %c0_i32_0 = arith.constant 0 : i32
    %c0_i32_1 = arith.constant 0 : i32
    return %c0_i32, %c0_i32_0 : i32, i32
  }
  func.func @transform_5(%arg0: i32) -> (i32, i32) {
    %c0_i32 = arith.constant 0 : i32
    %c0_i32_0 = arith.constant 0 : i32
    %c0_i32_1 = arith.constant 0 : i32
    return %c0_i32, %c0_i32_0 : i32, i32
  }
  func.func @transform_6(%arg0: i32) -> (i32, i32) {
    %c0_i32 = arith.constant 0 : i32
    %c0_i32_0 = arith.constant 0 : i32
    return %c0_i32, %arg0 : i32, i32
  }
}

</mosaic_0001>

<bundles_post_ra>
// kernel: tpu_custom_call.1
= control target key start
LH: loop header
LB: loop body
LE: loop exit
PB: predicated region body
PF: predicated region fallthrough
CT: control target
= control target key end

     0   :  { %s1319_s0 = inlined_call_operand.hbm [shape: f32[3,512], index: 0, kind: input, shape index: {}]   ;;  %s1320_s1 = inlined_call_operand.hbm [shape: f32[4,512], index: 1, kind: input, shape index: {}]   ;;  %s1321_s2 = inlined_call_operand.vmem [shape: f32[32,40], index: 2, kind: input, shape index: {}]   ;;  %s1322_s3 = inlined_call_operand.vmem [shape: f32[32,1], index: 3, kind: input, shape index: {}]   ;;  %s1323_s4 = inlined_call_operand.vmem [shape: f32[5,32], index: 4, kind: input, shape index: {}]   ;;  %s1324_s5 = inlined_call_operand.<no memory space> [shape: f32[1,1], index: 5, kind: input, shape index: {}]   ;;  %s1325_s6 = inlined_call_operand.hbm [shape: f32[1,512], index: 6, kind: output, shape index: {}]  }
   0x1   :  { %v11_v0 = vstv %s1324_s5 }
   0x2   :  { %12 = vst [vmem:[#allocation3] sm:$0x1] %v11_v0 }
   0x3   :  { %13 = vsyncpa [#allocation5], 0 }
   0x4   :  { %14 = vsyncpa [#allocation8], 0 }
   0x5   :  { %15 = vsyncpa [#allocation6], 0  ;;  %s975_s23 = smov [#allocation4]   ;;  %s976_s25 = smov [#allocation7]  }
   0x6   :  { %s22_s24 = sshll.u32 %s975_s23, 4  ;;  %s32_s26 = sshll.u32 %s976_s25, 4  ;;  %s23_s24 = int_to_ptr.vmem [resolvable:$true] %s22_s24  ;;  %s33_s26 = int_to_ptr.vmem [resolvable:$true] %s32_s26 }
   0x7   :  { %s917_s27 = scalar_lea.vmem %s23_s24, 256  ;;  %p922_p1 = scmp.lt.s32.totalorder %s23_s24, %s23_s24 }
   0x8   :  { %p918_p0 = scmp.ne.s32.totalorder %s23_s24, %s917_s27  ;;  %p923_p2 = scmp.lt.s32.totalorder %s917_s27, %s917_s27 }
   0xa   :  { %p924_p3 = por %p923_p2, %p922_p1 }
   0xc   :  { %p925_p4 = pnand %p924_p3, %p918_p0 }
   0xe   :  { %928 = shalt.err (!%p925_p4)
}
   0xf   :  { %25 = dma.hbm_to_vmem [thread:$0]  %s1319_s0, 256, %s23_s24, [#allocation5]  }
  0x10   :  { %s937_s5 = scalar_lea.vmem %s33_s26, 256  ;;  %p942_p6 = scmp.lt.s32.totalorder %s33_s26, %s33_s26 }
  0x11   :  { %p938_p5 = scmp.ne.s32.totalorder %s33_s26, %s937_s5  ;;  %p943_p7 = scmp.lt.s32.totalorder %s937_s5, %s937_s5 }
  0x13   :  { %p944_p8 = por %p943_p7, %p942_p6 }
  0x15   :  { %p945_p9 = pnand %p944_p8, %p938_p5 }
  0x17   :  { %948 = shalt.err (!%p945_p9)
}
  0x18   :  { %35 = dma.hbm_to_vmem [thread:$0]  %s1320_s1, 256, %s33_s26, [#allocation8]  }
  0x19   :  { %969 = dma.done.wait [#allocation5], 256  }
  0x1a   :  { %970 = vsyncadd [#allocation5], 4294967040 }
  0x1b   :  { %971 = dma.done.wait [#allocation8], 256  }
  0x1c   :  { %972 = vsyncadd [#allocation8], 4294967040  ;;  %v977_v1 = vmov 0.0   ;;  %v58_v2 = vld [vmem:[#allocation4 + $0x8] sm:$0x77]  ;;  %s978_s0 = smov 1   ;;  %v97_v12 = vlaneseq }
  0x1d   :  { %61 = vst [vmem:[#allocation2 + $0x50] sm:$0xff] %v977_v1  ;;  %59 = vst [vmem:[#allocation2] sm:$0xff] %v977_v1  ;;  %384 = vmatprep.mubr.f32.mxu0 %v977_v1  ;;  %473 = vmatprep.mubr.f32.mxu1 %v977_v1  ;;  %v57_v3 = vld [vmem:[#allocation4] sm:$0x77]  ;;  %v82_v4 = vcombine.high %v58_v2, %v58_v2  ;;  %s979_s1 = smov 127   ;;  %s980_s8 = smov 16  }
  0x1e   :  { %60 = vst [vmem:[#allocation2 + $0x38] sm:$0xff] %v977_v1  ;;  %62 = vst [vmem:[#allocation2 + $0x18] sm:$0xff] %v977_v1  ;;  %221 = vrot.lane.b32.xlu1 %v58_v2, %s978_s0  ;;  %217 = vrot.lane.b32.xlu0 %v57_v3, %s978_s0  ;;  %v81_v5 = vcombine.high %v57_v3, %v57_v3  ;;  %s981_s9 = smov 112   ;;  %v286_v6 = vld [vmem:[%s1322_s3 + $0x18] sm:$0xff]  ;;  %v285_v7 = vld [vmem:[%s1322_s3 + $0x10] sm:$0xff]  ;;  %v982_v8 = vmov 0  }
  0x1f   :  { %63 = vst [vmem:[#allocation2 + $0x30] sm:$0xff] %v977_v1  ;;  %64 = vst [vmem:[#allocation2 + $0x68] sm:$0xff] %v977_v1  ;;  %889 = vset.pattern.permute.xlu0 %v982_v8  ;;  %890 = vset.pattern.permute.xlu1 %v982_v8  ;;  %v283_v9 = vld [vmem:[%s1322_s3] sm:$0xff]  ;;  %v284_v10 = vld [vmem:[%s1322_s3 + $0x8] sm:$0xff]  ;;  %v1080_v13 = vshrl.u32 %v97_v12, 7  ;;  %v1083_v14 = vand.u32 127, %v97_v12 }
  0x20   :  { %65 = vst [vmem:[#allocation2 + $0x78] sm:$0xff] %v977_v1  ;;  %66 = vst [vmem:[#allocation2 + $0x80] sm:$0xff] %v977_v1  ;;  %v777_v11 = vld [vmem:[#allocation3] sm:$0x1]  ;;  %vm307_vm4 = vcmask 326656   ;;  %vm515_vm5 = vcmask 261120  }
  0x21   :  { %67 = vst [vmem:[#allocation2 + $0x8] sm:$0xff] %v977_v1  ;;  %68 = vst [vmem:[#allocation2 + $0x88] sm:$0xff] %v977_v1  ;;  %v1086_v15 = vsub.s32 0, %v1080_v13  ;;  %v1089_v16 = vsub.s32 3, %v1080_v13  ;;  %vm225_vm0 = vcmp.lt.s32.totalorder %v1083_v14, 1  ;;  %v1099_v23 = vsub.s32 1, %v1080_v13 }
  0x22   :  { %69 = vst [vmem:[#allocation2 + $0x28] sm:$0xff] %v977_v1  ;;  %70 = vst [vmem:[#allocation2 + $0x40] sm:$0xff] %v977_v1  ;;  %223 = vrot.lane.b32.xlu1 %v82_v4, %s978_s0  ;;  %175 = vrot.lane.b32.xlu0 %v57_v3, %s979_s1  ;;  %v56_v17 = vld [vmem:[#allocation7 + $0x3] ss:$4 sm:$0xf]  ;;  %v1102_v24 = vsub.s32 2, %v1080_v13 }
  0x23   :  { %71 = vst [vmem:[#allocation2 + $0x58] sm:$0xff] %v977_v1  ;;  %72 = vst [vmem:[#allocation2 + $0x10] sm:$0xff] %v977_v1  ;;  %v1093_v20 = vrot.slane %v56_v17, %v1086_v15  ;;  %v1096_v21 = vrot.slane %v56_v17, %v1089_v16  ;;  %v54_v22 = vld [vmem:[#allocation7 + $0x2] ss:$4 sm:$0xf]  ;;  %vm183_vm1 = vcmp.lt.s32.totalorder %v1083_v14, 127  ;;  %v1115_v32 = vrot.slane %v56_v17, %v1099_v23 }
  0x24   :  { %73 = vst [vmem:[#allocation2 + $0x98] sm:$0xff] %v977_v1  ;;  %74 = vst [vmem:[#allocation2 + $0x60] sm:$0xff] %v977_v1  ;;  %v1110_v29 = vrot.slane %v54_v22, %v1086_v15  ;;  %v1118_v33 = vrot.slane %v56_v17, %v1102_v24  ;;  %v1121_v36 = vrot.slane %v54_v22, %v1089_v16  ;;  %v52_v45 = vld [vmem:[#allocation7 + $0x1] ss:$4 sm:$0xf]  ;;  %vm141_vm2 = vcmp.lt.s32.totalorder %v1083_v14, 16 }
  0x25   :  { %75 = vst [vmem:[#allocation2 + $0x20] sm:$0xff] %v977_v1  ;;  %76 = vst [vmem:[#allocation2 + $0x48] sm:$0xff] %v977_v1  ;;  %v1130_v40 = vrot.slane %v54_v22, %v1099_v23  ;;  %v1136_v44 = vrot.slane %v54_v22, %v1102_v24  ;;  %v1149_v54 = vrot.slane %v52_v45, %v1099_v23  ;;  %vm99_vm3 = vcmp.lt.s32.totalorder %v1083_v14, 112 }
  0x26   :  { %77 = vst [vmem:[#allocation2 + $0x70] sm:$0xff] %v977_v1  ;;  %78 = vst [vmem:[#allocation2 + $0x90] sm:$0xff] %v977_v1  ;;  %177 = vrot.lane.b32.xlu1 %v81_v5, %s979_s1  ;;  %219 = vrot.lane.b32.xlu0 %v81_v5, %s978_s0  ;;  %v1155_v60 = vrot.slane %v52_v45, %v1086_v15  ;;  %v1158_v61 = vrot.slane %v52_v45, %v1102_v24  ;;  %vm846_vm6 = vcmp.lt.s32.totalorder %v97_v12, 512 }
  0x27   :  { %87 = vst [vmem:[#allocation2 + $0x50] sm:$0x7] %v58_v2  ;;  %85 = vst [vmem:[#allocation2] sm:$0x7] %v57_v3  ;;  %v1161_v62 = vrot.slane %v52_v45, %v1089_v16 }
  0x28   :  { %88 = vst [vmem:[#allocation2 + $0x18] sm:$0x7] %v82_v4  ;;  %86 = vst [vmem:[#allocation2 + $0x38] sm:$0x7] %v81_v5 }
  0x2a   :  { %181 = vrot.lane.b32.xlu1 %v82_v4, %s979_s1  ;;  %179 = vrot.lane.b32.xlu0 %v58_v2, %s979_s1 }
  0x2e   :  { %135 = vrot.lane.b32.xlu1 %v81_v5, %s980_s8  ;;  %133 = vrot.lane.b32.xlu0 %v57_v3, %s980_s8 }
  0x32   :  { %139 = vrot.lane.b32.xlu1 %v82_v4, %s980_s8  ;;  %137 = vrot.lane.b32.xlu0 %v58_v2, %s980_s8 }
  0x36   :  { %91 = vrot.lane.b32.xlu1 %v81_v5, %s981_s9  ;;  %89 = vrot.lane.b32.xlu0 %v57_v3, %s981_s9 }
  0x3a   :  { %95 = vrot.lane.b32.xlu1 %v82_v4, %s981_s9  ;;  %93 = vrot.lane.b32.xlu0 %v58_v2, %s981_s9  ;;  %v50_v2 = vld [vmem:[#allocation7] ss:$4 sm:$0xf] }
  0x3b   :  { %v1174_v17 = vrot.slane %v50_v2, %v1086_v15 }
  0x3e   :  { %304 = vperm.xlu0 %889, %v286_v6   ;;  %299 = vperm.xlu1 %890, %v285_v7  }
  0x42   :  { %289 = vperm.xlu0 %889, %v283_v9   ;;  %294 = vperm.xlu1 %890, %v284_v10  }
  0x46   :  { %780 = vperm.xlu1 %890, %v777_v11  }
  0x90   :  { %v222_v18 = vpop.permute.xlu1 %221  ;;  %v218_v19 = vpop.permute.xlu0 %217 }
  0x94   :  { %v224_v25 = vpop.permute.xlu1 %223  ;;  %v176_v26 = vpop.permute.xlu0 %175 }
  0x95   :  { %v226_v27 = vsel %vm225_vm0, %v222_v18, %v224_v25  ;;  %v229_v28 = vsel %vm225_vm0, %v224_v25, %v218_v19 }
  0x96   :  { %v251_v30 = vmul.f32 %v1093_v20, %v229_v28  ;;  %v254_v31 = vmul.f32 %v1096_v21, %v226_v27 }
  0x98   :  { %255 = vst [vmem:[#allocation2 + $0x20] sm:$0x7] %v251_v30  ;;  %258 = vst [vmem:[#allocation2 + $0x90] sm:$0x7] %v254_v31  ;;  %v178_v34 = vpop.permute.xlu1 %177  ;;  %v220_v35 = vpop.permute.xlu0 %219  ;;  %v1180_v31 = vrot.slane %v50_v2, %v1089_v16 }
  0x99   :  { %v186_v37 = vsel %vm183_vm1, %v176_v26, %v178_v34  ;;  %v227_v38 = vsel %vm225_vm0, %v220_v35, %v222_v18  ;;  %v228_v39 = vsel %vm225_vm0, %v218_v19, %v220_v35  ;;  %v1186_v35 = vrot.slane %v50_v2, %v1102_v24 }
  0x9a   :  { %v209_v41 = vmul.f32 %v1110_v29, %v186_v37  ;;  %v252_v42 = vmul.f32 %v1115_v32, %v228_v39  ;;  %v253_v43 = vmul.f32 %v1118_v33, %v227_v38 }
  0x9c   :  { %213 = vst [vmem:[#allocation2 + $0x58] sm:$0x7] %v209_v41  ;;  %256 = vst [vmem:[#allocation2 + $0x48] sm:$0x7] %v252_v42  ;;  %v182_v46 = vpop.permute.xlu1 %181  ;;  %v180_v47 = vpop.permute.xlu0 %179 }
  0x9d   :  { %257 = vst [vmem:[#allocation2 + $0x70] sm:$0x7] %v253_v43  ;;  %v187_v48 = vsel %vm183_vm1, %v182_v46, %v176_v26  ;;  %v184_v49 = vsel %vm183_vm1, %v180_v47, %v182_v46  ;;  %v185_v50 = vsel %vm183_vm1, %v178_v34, %v180_v47  ;;  %v1183_v34 = vrot.slane %v50_v2, %v1099_v23 }
  0x9e   :  { %v212_v51 = vmul.f32 %v1121_v36, %v187_v48  ;;  %v210_v52 = vmul.f32 %v1130_v40, %v185_v50  ;;  %v211_v53 = vmul.f32 %v1136_v44, %v184_v49  ;;  %v264_v48 = vld [vmem:[#allocation2 + $0x38] sm:$0xff] }
  0x9f   :  { %v282_v55 = vld [vmem:[#allocation2 + $0x90] sm:$0xff]  ;;  %v279_v5 = vld [vmem:[#allocation2 + $0x20] sm:$0xff]  ;;  %v266_v49 = vld [vmem:[#allocation2 + $0x18] sm:$0xff] }
  0xa0   :  { %216 = vst [vmem:[#allocation2 + $0x60] sm:$0x7] %v212_v51  ;;  %214 = vst [vmem:[#allocation2 + $0x10] sm:$0x7] %v210_v52  ;;  %v136_v56 = vpop.permute.xlu1 %135  ;;  %v134_v57 = vpop.permute.xlu0 %133  ;;  %431 = vmatprep.subr.mxu1 %v282_v55  ;;  %v263_v55 = vld [vmem:[#allocation2] sm:$0xff] }
  0xa1   :  { %215 = vst [vmem:[#allocation2 + $0x98] sm:$0x7] %v211_v53  ;;  %v144_v58 = vsel %vm141_vm2, %v134_v57, %v136_v56 }
  0xa2   :  { %v168_v59 = vmul.f32 %v1149_v54, %v144_v58  ;;  %v260_v58 = vld [vmem:[%s1321_s2 + $0x8] sm:$0xff] }
  0xa3   :  { %v280_v63 = vld [vmem:[#allocation2 + $0x48] sm:$0xff]  ;;  %v275_v27 = vld [vmem:[#allocation2 + $0x58] sm:$0xff] }
  0xa4   :  { %v281_v0 = vld [vmem:[#allocation2 + $0x70] sm:$0xff]  ;;  %172 = vst [vmem:[#allocation2 + $0x88] sm:$0x7] %v168_v59  ;;  %v140_v3 = vpop.permute.xlu1 %139  ;;  %v138_v4 = vpop.permute.xlu0 %137  ;;  %342 = vmatprep.subr.mxu0 %v280_v63  ;;  %v262_v63 = vld [vmem:[%s1321_s2 + $0x18] sm:$0xff] }
  0xa5   :  { %432 = vmatpush1.msra.mxu1 %v281_v0  ;;  %v145_v6 = vsel %vm141_vm2, %v140_v3, %v134_v57  ;;  %v142_v7 = vsel %vm141_vm2, %v138_v4, %v140_v3  ;;  %v143_v8 = vsel %vm141_vm2, %v136_v56, %v138_v4  ;;  %343 = vmatpush1.msra.mxu0 %v279_v5  ;;  %v265_v56 = vld [vmem:[#allocation2 + $0x50] sm:$0xff]  ;;  %v259_v57 = vld [vmem:[%s1321_s2] sm:$0xff] }
  0xa6   :  { %v167_v9 = vmul.f32 %v1155_v60, %v145_v6  ;;  %v169_v10 = vmul.f32 %v1158_v61, %v143_v8  ;;  %v170_v11 = vmul.f32 %v1161_v62, %v142_v7  ;;  %v261_v59 = vld [vmem:[%s1321_s2 + $0x10] sm:$0xff] }
  0xa7   :  { %v276_v18 = vld [vmem:[#allocation2 + $0x10] sm:$0xff]  ;;  %v278_v19 = vld [vmem:[#allocation2 + $0x60] sm:$0xff] }
  0xa8   :  { %v277_v22 = vld [vmem:[#allocation2 + $0x98] sm:$0xff]  ;;  %171 = vst [vmem:[#allocation2 + $0x8] sm:$0x7] %v167_v9  ;;  %173 = vst [vmem:[#allocation2 + $0x28] sm:$0x7] %v169_v10  ;;  %v92_v25 = vpop.permute.xlu1 %91  ;;  %v90_v26 = vpop.permute.xlu0 %89  ;;  %344 = vmatprep.subr.mxu0 %v276_v18  ;;  %433 = vmatprep.subr.mxu1 %v278_v19 }
  0xa9   :  { %174 = vst [vmem:[#allocation2 + $0x40] sm:$0x7] %v170_v11  ;;  %v102_v28 = vsel %vm99_vm3, %v90_v26, %v92_v25  ;;  %345 = vmatpush1.msra.mxu0 %v275_v27  ;;  %434 = vmatpush1.msra.mxu1 %v277_v22 }
  0xaa   :  { %v125_v30 = vmul.f32 %v1174_v17, %v102_v28 }
  0xab   :  { %v272_v37 = vld [vmem:[#allocation2 + $0x88] sm:$0xff] }
  0xac   :  { %129 = vst [vmem:[#allocation2 + $0x30] sm:$0x7] %v125_v30  ;;  %v96_v38 = vpop.permute.xlu1 %95  ;;  %v94_v39 = vpop.permute.xlu0 %93  ;;  %346 = vmatprep.subr.mxu0 %v272_v37 }
  0xad   :  { %v103_v41 = vsel %vm99_vm3, %v96_v38, %v90_v26  ;;  %v100_v42 = vsel %vm99_vm3, %v94_v39, %v96_v38  ;;  %v101_v16 = vsel %vm99_vm3, %v92_v25, %v94_v39 }
  0xae   :  { %v128_v23 = vmul.f32 %v1180_v31, %v103_v41  ;;  %v126_v43 = vmul.f32 %v1183_v34, %v101_v16  ;;  %v127_v24 = vmul.f32 %v1186_v35, %v100_v42 }
  0xaf   :  { %v271_v45 = vld [vmem:[#allocation2 + $0x8] sm:$0xff] }
  0xb0   :  { %v274_v46 = vld [vmem:[#allocation2 + $0x40] sm:$0xff]  ;;  %v273_v47 = vld [vmem:[#allocation2 + $0x28] sm:$0xff]  ;;  %132 = vst [vmem:[#allocation2 + $0x80] sm:$0x7] %v128_v23  ;;  %130 = vst [vmem:[#allocation2 + $0x68] sm:$0x7] %v126_v43  ;;  %347 = vmatpush1.msra.mxu0 %v271_v45 }
  0xb1   :  { %131 = vst [vmem:[#allocation2 + $0x78] sm:$0x7] %v127_v24  ;;  %435 = vmatprep.subr.mxu1 %v274_v46 }
  0xb2   :  { %436 = vmatpush1.msra.mxu1 %v273_v47 }
  0xb3   :  { %v267_v53 = vld [vmem:[#allocation2 + $0x30] sm:$0xff] }
  0xb7   :  { %v268_v50 = vld [vmem:[#allocation2 + $0x68] sm:$0xff]  ;;  %v270_v51 = vld [vmem:[#allocation2 + $0x80] sm:$0xff] }
  0xb8   :  { %v269_v52 = vld [vmem:[#allocation2 + $0x78] sm:$0xff]  ;;  %348 = vmatprep.subr.mxu0 %v268_v50  ;;  %437 = vmatprep.subr.mxu1 %v270_v51 }
  0xb9   :  { %349 = vmatpush1.msra.mxu0 %v267_v53  ;;  %438 = vmatpush1.msra.mxu1 %v269_v52  ;;  %v300_v11 = vpop.permute.xlu1 %299  ;;  %v305_v22 = vpop.permute.xlu0 %304 }
  0xba   :  { %350 = vmatprep.subr.mxu0 %v264_v48  ;;  %439 = vmatprep.subr.mxu1 %v266_v49 }
  0xbb   :  { %351 = vmatpush1.msra.mxu0 %v263_v55  ;;  %440 = vmatpush1.msra.mxu1 %v265_v56 }
  0xbc   :  { %865 = vmatmul.mubr.msk.f32.vlgmr.msra.gmra.mxu0 %vm307_vm4, %v259_v57  ;;  %869 = vmatmul.mubr.msk.f32.vlgmr.msra.gmra.mxu1 %vm307_vm4, %v259_v57 }
  0xbd   :  { %390 = vmatprep.mubr.f32.mxu0 %v977_v1  ;;  %479 = vmatprep.mubr.f32.mxu1 %v977_v1  ;;  %v295_v37 = vpop.permute.xlu1 %294  ;;  %v290_v24 = vpop.permute.xlu0 %289 }
  0xc0   :  { %866 = vmatmul.mubr.msk.f32.gmra.mxu0 %vm307_vm4, %v260_v58  ;;  %870 = vmatmul.mubr.msk.f32.gmra.mxu1 %vm307_vm4, %v260_v58 }
  0xc1   :  { %396 = vmatprep.mubr.f32.mxu0 %v977_v1  ;;  %485 = vmatprep.mubr.f32.mxu1 %v977_v1 }
  0xc4   :  { %867 = vmatmul.mubr.msk.f32.gmra.mxu0 %vm307_vm4, %v261_v59  ;;  %871 = vmatmul.mubr.msk.f32.gmra.mxu1 %vm307_vm4, %v261_v59 }
  0xc5   :  { %402 = vmatprep.mubr.f32.mxu0 %v977_v1  ;;  %491 = vmatprep.mubr.f32.mxu1 %v977_v1 }
  0xc8   :  { %868 = vmatmul.mubr.msk.f32.gmra.mxu0 %vm307_vm4, %v262_v63  ;;  %872 = vmatmul.mubr.msk.f32.gmra.mxu1 %vm307_vm4, %v262_v63 }
  0xc9   :  { %583 = vmatprep.mubr.f32.mxu0 %v977_v1  ;;  %654 = vmatprep.mubr.f32.mxu1 %v977_v1 }
 0x17c   :  { %v386_v0 = vpop.f32.mrf.mxu0  ;;  %v475_v2 = vpop.f32.mrf.mxu1 }
 0x17d   :  { %v387_v57 = vadd.f32 %v386_v0, %v290_v24  ;;  %v476_v58 = vadd.f32 %v475_v2, %v290_v24  ;;  %v514_v0 = vld [vmem:[%s1323_s4] sm:$0x1f]  ;;  %s984_s4 = smov [#allocation9]  }
 0x17e   :  { %v388_v3 = vpop.f32.mrf.mxu0  ;;  %v477_v4 = vpop.f32.mrf.mxu1  ;;  %s855_s26 = sshll.u32 %s984_s4, 4  ;;  %s856_s26 = int_to_ptr.vmem [resolvable:$true] %s855_s26 }
 0x17f   :  { %v389_v52 = vadd.f32 %v388_v3, %v290_v24  ;;  %v478_v53 = vadd.f32 %v477_v4, %v290_v24  ;;  %s949_s27 = scalar_lea.vmem %s856_s26, 64  ;;  %p954_p11 = scmp.lt.s32.totalorder %s856_s26, %s856_s26 }
 0x180   :  { %v392_v5 = vpop.f32.mrf.mxu0  ;;  %v481_v6 = vpop.f32.mrf.mxu1  ;;  %p950_p10 = scmp.ne.s32.totalorder %s856_s26, %s949_s27  ;;  %p955_p12 = scmp.lt.s32.totalorder %s949_s27, %s949_s27 }
 0x181   :  { %v393_v49 = vadd.f32 %v392_v5, %v295_v37  ;;  %v482_v50 = vadd.f32 %v481_v6, %v295_v37  ;;  %v499_v3 = vmax.f32 %v389_v52, 0.0  ;;  %v501_v4 = vmax.f32 %v478_v53, 0.0 }
 0x182   :  { %v394_v7 = vpop.f32.mrf.mxu0  ;;  %v483_v8 = vpop.f32.mrf.mxu1  ;;  %v498_v6 = vmax.f32 %v387_v57, 0.0  ;;  %p956_p13 = por %p955_p12, %p954_p11 }
 0x183   :  { %v395_v45 = vadd.f32 %v394_v7, %v295_v37  ;;  %v484_v46 = vadd.f32 %v483_v8, %v295_v37  ;;  %v502_v8 = vmax.f32 %v393_v49, 0.0  ;;  %v504_v5 = vmax.f32 %v482_v50, 0.0 }
 0x184   :  { %v398_v9 = vpop.f32.mrf.mxu0  ;;  %v487_v10 = vpop.f32.mrf.mxu1  ;;  %p957_p0 = pnand %p956_p13, %p950_p10 }
 0x185   :  { %v399_v16 = vadd.f32 %v398_v9, %v300_v11  ;;  %v488_v23 = vadd.f32 %v487_v10, %v300_v11  ;;  %v503_v9 = vmax.f32 %v395_v45, 0.0  ;;  %v505_v7 = vmax.f32 %v484_v46, 0.0  ;;  %v781_v45 = vpop.permute.xlu1 %780 }
 0x186   :  { %v400_v18 = vpop.f32.mrf.mxu0  ;;  %v489_v19 = vpop.f32.mrf.mxu1  ;;  %v500_v10 = vmax.f32 %v476_v58, 0.0 }
 0x187   :  { %v401_v38 = vadd.f32 %v400_v18, %v300_v11  ;;  %v490_v39 = vadd.f32 %v489_v19, %v300_v11  ;;  %v506_v59 = vmax.f32 %v399_v16, 0.0  ;;  %v508_v63 = vmax.f32 %v488_v23, 0.0 }
 0x188   :  { %v404_v25 = vpop.f32.mrf.mxu0  ;;  %v493_v26 = vpop.f32.mrf.mxu1 }
 0x189   :  { %v494_v27 = vadd.f32 %v493_v26, %v305_v22  ;;  %v405_v28 = vadd.f32 %v404_v25, %v305_v22  ;;  %v507_v55 = vmax.f32 %v401_v38, 0.0  ;;  %v509_v56 = vmax.f32 %v490_v39, 0.0 }
 0x18a   :  { %v406_v30 = vpop.f32.mrf.mxu0  ;;  %v495_v1 = vpop.f32.mrf.mxu1 }
 0x18b   :  { %v407_v41 = vadd.f32 %v406_v30, %v305_v22  ;;  %v496_v42 = vadd.f32 %v495_v1, %v305_v22  ;;  %v512_v43 = vmax.f32 %v494_v27, 0.0  ;;  %v510_v51 = vmax.f32 %v405_v28, 0.0 }
 0x18d   :  { %v511_v47 = vmax.f32 %v407_v41, 0.0  ;;  %v513_v48 = vmax.f32 %v496_v42, 0.0 }
 0x18f   :  { %543 = vmatprep.subr.mxu0 %v511_v47  ;;  %614 = vmatprep.subr.mxu1 %v513_v48 }
 0x190   :  { %544 = vmatpush1.msra.mxu0 %v510_v51  ;;  %615 = vmatpush1.msra.mxu1 %v512_v43 }
 0x191   :  { %545 = vmatprep.subr.mxu0 %v507_v55  ;;  %616 = vmatprep.subr.mxu1 %v509_v56 }
 0x192   :  { %546 = vmatpush1.msra.mxu0 %v506_v59  ;;  %617 = vmatpush1.msra.mxu1 %v508_v63 }
 0x193   :  { %547 = vmatprep.subr.mxu0 %v503_v9  ;;  %618 = vmatprep.subr.mxu1 %v505_v7 }
 0x194   :  { %548 = vmatpush1.msra.mxu0 %v502_v8  ;;  %619 = vmatpush1.msra.mxu1 %v504_v5 }
 0x195   :  { %549 = vmatprep.subr.mxu0 %v499_v3  ;;  %620 = vmatprep.subr.mxu1 %v501_v4 }
 0x196   :  { %550 = vmatpush1.msra.mxu0 %v498_v6  ;;  %621 = vmatpush1.msra.mxu1 %v500_v10 }
 0x197   :  { %873 = vmatmul.mubr.msk.f32.vlgmr.msra.gmra.mxu0 %vm515_vm5, %v514_v0  ;;  %874 = vmatmul.mubr.msk.f32.vlgmr.msra.gmra.mxu1 %vm515_vm5, %v514_v0 }
 0x257   :  { %v1228_v2 = vpop.f32.mrf.mxu0  ;;  %v1234_v22 = vpop.f32.mrf.mxu1 }
 0x258   :  { %v749_v11 = vrot.slane %v1228_v2, 4  ;;  %v665_v18 = vrot.slane %v1228_v2, 1  ;;  %v667_v25 = vrot.slane %v1234_v22, 1  ;;  %v693_v28 = vrot.slane %v1228_v2, 2 }
 0x259   :  { %v1232_v19 = vpop.f32.mrf.mxu0  ;;  %v658_v27 = vpop.f32.mrf.mxu1  ;;  %v695_v1 = vrot.slane %v1234_v22, 2  ;;  %v721_v38 = vrot.slane %v1228_v2, 3  ;;  %v723_v41 = vrot.slane %v1234_v22, 3  ;;  %v751_v24 = vrot.slane %v1234_v22, 4 }
 0x25a   :  { %757 = vrot.lane.b32.xlu0 %v749_v11, %s978_s0  ;;  %673 = vrot.lane.b32.xlu1 %v665_v18, %s981_s9  ;;  %v666_v26 = vrot.slane %v1232_v19, 1  ;;  %v668_v30 = vrot.slane %v658_v27, 1  ;;  %v694_v37 = vrot.slane %v1232_v19, 2  ;;  %v696_v39 = vrot.slane %v658_v27, 2 }
 0x25b   :  { %v722_v42 = vrot.slane %v1232_v19, 3  ;;  %v750_v16 = vrot.slane %v1232_v19, 4  ;;  %v724_v23 = vrot.slane %v658_v27, 3  ;;  %v752_v43 = vrot.slane %v658_v27, 4 }
 0x25e   :  { %677 = vrot.lane.b32.xlu1 %v667_v25, %s981_s9  ;;  %675 = vrot.lane.b32.xlu0 %v666_v26, %s981_s9 }
 0x262   :  { %701 = vrot.lane.b32.xlu1 %v693_v28, %s980_s8  ;;  %679 = vrot.lane.b32.xlu0 %v668_v30, %s981_s9 }
 0x266   :  { %705 = vrot.lane.b32.xlu1 %v695_v1, %s980_s8  ;;  %703 = vrot.lane.b32.xlu0 %v694_v37, %s980_s8 }
 0x26a   :  { %729 = vrot.lane.b32.xlu1 %v721_v38, %s979_s1  ;;  %707 = vrot.lane.b32.xlu0 %v696_v39, %s980_s8 }
 0x26e   :  { %733 = vrot.lane.b32.xlu1 %v723_v41, %s979_s1  ;;  %731 = vrot.lane.b32.xlu0 %v722_v42, %s979_s1 }
 0x272   :  { %759 = vrot.lane.b32.xlu1 %v750_v16, %s978_s0  ;;  %735 = vrot.lane.b32.xlu0 %v724_v23, %s979_s1  ;;  %v786_v16 = vrot.slane %v781_v45, %v1086_v15 }
 0x276   :  { %763 = vrot.lane.b32.xlu1 %v752_v43, %s978_s0  ;;  %761 = vrot.lane.b32.xlu0 %v751_v24, %s978_s0 }
 0x2cc   :  { %v758_v46 = vpop.permute.xlu0 %757  ;;  %v674_v47 = vpop.permute.xlu1 %673 }
 0x2d0   :  { %v678_v48 = vpop.permute.xlu1 %677  ;;  %v676_v49 = vpop.permute.xlu0 %675 }
 0x2d1   :  { %v682_v55 = vsel %vm99_vm3, %v676_v49, %v678_v48  ;;  %v683_v57 = vsel %vm99_vm3, %v674_v47, %v676_v49 }
 0x2d2   :  { %v686_v8 = vmul.f32 %v682_v55, %v1183_v34  ;;  %v685_v4 = vmul.f32 %v683_v57, %v1174_v17 }
 0x2d4   :  { %v702_v50 = vpop.permute.xlu1 %701  ;;  %v680_v51 = vpop.permute.xlu0 %679  ;;  %v690_v17 = vadd.f32 %v686_v8, %v1232_v19 }
 0x2d5   :  { %v681_v56 = vsel %vm99_vm3, %v678_v48, %v680_v51  ;;  %v684_v63 = vsel %vm99_vm3, %v680_v51, %v674_v47 }
 0x2d6   :  { %v687_v5 = vmul.f32 %v681_v56, %v1186_v35  ;;  %v688_v6 = vmul.f32 %v684_v63, %v1180_v31 }
 0x2d8   :  { %v706_v52 = vpop.permute.xlu1 %705  ;;  %v704_v53 = vpop.permute.xlu0 %703  ;;  %v691_v31 = vadd.f32 %v687_v5, %v1234_v22  ;;  %v692_v30 = vadd.f32 %v688_v6, %v658_v27 }
 0x2d9   :  { %v710_v9 = vsel %vm141_vm2, %v704_v53, %v706_v52  ;;  %v711_v7 = vsel %vm141_vm2, %v702_v50, %v704_v53 }
 0x2da   :  { %v714_v10 = vmul.f32 %v711_v7, %v1149_v54  ;;  %v715_v0 = vmul.f32 %v710_v9, %v1158_v61  ;;  %v689_v61 = vadd.f32 %v685_v4, %v1228_v2  ;;  %v983_v4 = vmov 1966171168  }
 0x2db   :  { %v822_v6 = vunpack.c.l.s4 %v983_v4 }
 0x2dc   :  { %v730_v58 = vpop.permute.xlu1 %729  ;;  %v708_v59 = vpop.permute.xlu0 %707  ;;  %v718_v1 = vadd.f32 %v714_v10, %v690_v17  ;;  %v719_v37 = vadd.f32 %v715_v0, %v691_v31 }
 0x2dd   :  { %v712_v3 = vsel %vm141_vm2, %v708_v59, %v702_v50  ;;  %v709_v11 = vsel %vm141_vm2, %v706_v52, %v708_v59  ;;  %v823_v10 = vunpack.c.0.s8 %v822_v6 }
 0x2de   :  { %v713_v34 = vmul.f32 %v712_v3, %v1155_v60  ;;  %v716_v28 = vmul.f32 %v709_v11, %v1161_v62 }
 0x2df   :  { %v826_v11 = vsub.s32 %v823_v10, %v1080_v13 }
 0x2e0   :  { %v734_v18 = vpop.permute.xlu1 %733  ;;  %v732_v25 = vpop.permute.xlu0 %731  ;;  %v717_v41 = vadd.f32 %v713_v34, %v689_v61 }
 0x2e1   :  { %v738_v35 = vsel %vm183_vm1, %v732_v25, %v734_v18  ;;  %v739_v26 = vsel %vm183_vm1, %v730_v58, %v732_v25 }
 0x2e2   :  { %v742_v54 = vmul.f32 %v738_v35, %v1130_v40  ;;  %v741_v60 = vmul.f32 %v739_v26, %v1110_v29  ;;  %v720_v29 = vadd.f32 %v716_v28, %v692_v30 }
 0x2e4   :  { %v760_v38 = vpop.permute.xlu1 %759  ;;  %v736_v39 = vpop.permute.xlu0 %735  ;;  %v746_v2 = vadd.f32 %v742_v54, %v718_v1  ;;  %v745_v23 = vadd.f32 %v741_v60, %v717_v41 }
 0x2e5   :  { %v767_v42 = vsel %vm225_vm0, %v758_v46, %v760_v38  ;;  %v737_v19 = vsel %vm183_vm1, %v734_v18, %v736_v39  ;;  %v740_v40 = vsel %vm183_vm1, %v736_v39, %v730_v58 }
 0x2e6   :  { %v770_v62 = vmul.f32 %v767_v42, %v1115_v32  ;;  %v743_v22 = vmul.f32 %v737_v19, %v1136_v44  ;;  %v744_v27 = vmul.f32 %v740_v40, %v1121_v36 }
 0x2e8   :  { %v774_v43 = vadd.f32 %v770_v62, %v746_v2  ;;  %v747_v24 = vadd.f32 %v743_v22, %v719_v37  ;;  %v764_v47 = vpop.permute.xlu1 %763  ;;  %v762_v48 = vpop.permute.xlu0 %761  ;;  %v748_v49 = vadd.f32 %v744_v27, %v720_v29 }
 0x2e9   :  { %v768_v50 = vsel %vm225_vm0, %v764_v47, %v758_v46  ;;  %v765_v51 = vsel %vm225_vm0, %v762_v48, %v764_v47  ;;  %v766_v32 = vsel %vm225_vm0, %v760_v38, %v762_v48 }
 0x2ea   :  { %v788_v44 = vadd.f32 %v786_v16, %v774_v43  ;;  %v769_v36 = vmul.f32 %v768_v50, %v1093_v20  ;;  %v771_v15 = vmul.f32 %v766_v32, %v1118_v33  ;;  %v772_v45 = vmul.f32 %v765_v51, %v1096_v21 }
 0x2ec   :  { %v876_v52 = vmul.f32 -1.442695, %v788_v44  ;;  %v773_v53 = vadd.f32 %v769_v36, %v745_v23  ;;  %v775_v55 = vadd.f32 %v771_v15, %v747_v24  ;;  %v776_v56 = vadd.f32 %v772_v45, %v748_v49 }
 0x2ee   :  { %893 = vpow2.f32 %v876_v52  ;;  %v787_v57 = vadd.f32 %v786_v16, %v773_v53  ;;  %v789_v46 = vadd.f32 %v786_v16, %v775_v55  ;;  %v790_v58 = vadd.f32 %v786_v16, %v776_v56 }
 0x2f0   :  { %v875_v59 = vmul.f32 -1.442695, %v787_v57  ;;  %v877_v63 = vmul.f32 -1.442695, %v789_v46  ;;  %v878_v9 = vmul.f32 -1.442695, %v790_v58 }
 0x2f2   :  { %895 = vpow2.f32 %v875_v59 }
 0x2f3   :  { %897 = vpow2.f32 %v877_v63 }
 0x2f4   :  { %899 = vpow2.f32 %v878_v9 }
 0x2fb   :  { %v894_v14 = vpop.eup %893 }
 0x2fc   :  { %v804_v20 = vadd.f32 1.0, %v894_v14 }
 0x2fe   :  { %901 = vrcp.f32 %v804_v20 }
 0x2ff   :  { %v896_v7 = vpop.eup %895 }
 0x300   :  { %v898_v33 = vpop.eup %897  ;;  %v803_v8 = vadd.f32 1.0, %v896_v7 }
 0x301   :  { %v900_v21 = vpop.eup %899  ;;  %v805_v5 = vadd.f32 1.0, %v898_v33 }
 0x302   :  { %903 = vrcp.f32 %v803_v8  ;;  %v806_v3 = vadd.f32 1.0, %v900_v21 }
 0x303   :  { %905 = vrcp.f32 %v805_v5 }
 0x304   :  { %907 = vrcp.f32 %v806_v3 }
 0x30b   :  { %v902_v0 = vpop.eup %901 }
 0x30f   :  { %v904_v18 = vpop.eup %903 }
 0x310   :  { %v906_v25 = vpop.eup %905  ;;  %v819_v34 = vcombine.low %v904_v18, %v902_v0 }
 0x311   :  { %v908_v35 = vpop.eup %907 }
 0x312   :  { %v820_v26 = vcombine.low %v906_v25, %v908_v35  ;;  %v827_v17 = vrot.slane %v819_v34, %v826_v11 }
 0x314   :  { %v834_v31 = vrot.slane %v820_v26, %v826_v11 }
 0x316   :  { %v835_v54 = vcombine.low %v827_v17, %v834_v31 }
 0x318   :  { %v842_v61 = vrot.slane %v835_v54, %v826_v11 }
 0x31a   :  { %848 = vst.msk [vmem:[#allocation9] sm:$0xf] %vm846_vm6, %v842_v61 }
 0x31b   :  { %960 = shalt.err (!%p957_p0)
}
 0x31c   :  { %858 = dma.vmem_to_hbm [thread:$0]  %s856_s26, 64, %s1325_s6, [#allocation6]  }
 0x31d   :  { %973 = dma.done.wait [#allocation6], 64  }
 0x31e   :  { %974 = vsyncadd [#allocation6], 4294967232 }
 0x31f   :  { %862 = vsyncpa [#allocation5], 1 }
 0x320   :  { %863 = vsyncpa [#allocation8], 1 }
 0x321   :  { %864 = vsyncpa [#allocation6], 1 }

</bundles_post_ra>
